<compile_context>
chip_gen: v5e
topology: v5e:2x2
jax: 0.10.0
libtpu: 0.0.40
codegen_flags: <defaults>
</compile_context>

<pallas_src>
import functools

import jax
import jax.numpy as jnp
from jax import lax
from jax.experimental import pallas as pl
from jax.experimental.pallas import tpu as pltpu

HIDDEN = 32
BB_MAX = 32768            # upper bound on the batch tile
BB_ALIGN = 256            # MXU/lane friendly alignment for multi-block tiles
MAX_SINGLE_BLOCK_F = 1024  # above this, chunk the feature axis on a K grid axis


def _round_up(x, m):
    return (x + m - 1) // m * m


def mlp_kernel(x_ref,
               w0_ref, b0_ref,
               w1_ref, b1_ref,
               w2_ref, b2_ref,
               w3_ref, b3_ref,
               w4_ref, b4_ref,
               o_ref,
               acc_ref,
               *, compute_dtype):
    """Fused 5-layer MLP on one (block_b, block_f) tile.

    Grid is (batch_blocks, feature_blocks).  Layer 0 accumulates over the
    feature-chunk axis into a (32, bb) f32 scratch; layers 1..4 and the
    lane-dense (1, bb) store run only on the last feature chunk.  Weights are
    pre-cast to compute_dtype in the wrapper (biases stay f32).  Everything is
    evaluated in transposed orientation (units on sublanes, batch on lanes) so
    the output stores lane-dense.
    """
    f32 = jnp.float32
    k = pl.program_id(1)

    @pl.when(k == 0)
    def _():
        acc_ref[...] = jnp.zeros_like(acc_ref)

    # Layer 0 partial sum: (32, bf) @ (bb, bf)^T -> (32, bb), f32 accumulation.
    # The x transpose is folded into the dot's dimension numbers.
    x = x_ref[...].astype(compute_dtype)
    acc_ref[...] += lax.dot_general(
        w0_ref[...], x,
        dimension_numbers=(((1,), (1,)), ((), ())),
        preferred_element_type=f32)

    @pl.when(k == pl.num_programs(1) - 1)
    def _():
        # Carry h in compute_dtype (bf16) between layers: the down-cast is fused
        # into the bias+ReLU epilogue, halving the live (32, bb) intermediates.
        h = jnp.maximum(acc_ref[...] + b0_ref[...], 0.0).astype(compute_dtype)
        for w_ref, b_ref in ((w1_ref, b1_ref), (w2_ref, b2_ref), (w3_ref, b3_ref)):
            hh = jnp.dot(w_ref[...], h, preferred_element_type=f32)
            h = jnp.maximum(hh + b_ref[...], 0.0).astype(compute_dtype)
        out = jnp.dot(w4_ref[...], h, preferred_element_type=f32) + b4_ref[...]
        o_ref[0] = out.astype(o_ref.dtype)


def mlp_explicit_forward(x, params, *, block_b=None, block_f=None,
                         compute_dtype=jnp.bfloat16):
    """x: [B, F] float32. params: list of (W [out, in], b [out, 1]) PyTorch-layout pairs."""
    B, F = x.shape
    out_dtype = x.dtype

    # ---- generation-aware VMEM budget ----------------------------------------
    try:
        vmem_cap = int(pltpu.get_tpu_info().vmem_capacity_bytes)
    except Exception:
        vmem_cap = 64 * 1024 * 1024          # conservative (v7x-sized) fallback
    vmem_budget = vmem_cap // 2              # budget for tile selection
    vmem_limit = (vmem_cap * 3) // 4         # scoped VMEM limit with headroom

    # ---- feature-axis chunking (K grid axis for very wide inputs) --------------
    if block_f is None:
        block_f = F if F <= MAX_SINGLE_BLOCK_F else 512
    if block_f < F:
        block_f = _round_up(block_f, 128)
    if block_f >= F:
        block_f = F
        Fp = F
        grid_k = 1
    else:
        Fp = _round_up(F, block_f)
        grid_k = Fp // block_f

    # ---- batch tile from the *padded* VMEM footprint ---------------------------
    # A (bb, block_f) block occupies round_up(block_f, 128) lanes per row in VMEM.
    lanes = _round_up(block_f, 128)
    in_itemsize = jnp.dtype(x.dtype).itemsize
    c_itemsize = jnp.dtype(compute_dtype).itemsize
    bytes_per_row = (
        2 * lanes * in_itemsize        # double-buffered x tile
        + lanes * c_itemsize           # in-kernel compute_dtype copy of x
        + HIDDEN * 4                   # f32 layer-0 accumulator scratch
        + 2 * HIDDEN * 4               # live f32 matmul temporaries
        + 3 * HIDDEN * c_itemsize      # live bf16 h intermediates
        + 2 * 8 * 4                    # double-buffered (1, 1, bb) f32 output block
    )
    fixed_bytes = 2 * 1024 * 1024      # weights/biases + compiler scratch slack
    max_bb = max(BB_ALIGN,
                 ((vmem_budget - fixed_bytes) // bytes_per_row) // BB_ALIGN * BB_ALIGN)

    if block_b is not None:
        bb = min(_round_up(block_b, 128), max_bb)
        bb = min(bb, _round_up(B, 128))
    elif B <= 256:
        bb = _round_up(B, 128)                       # tiny batch: one block
    else:
        # Clamp the tile UP to the VMEM-derived maximum, but keep grid_b >= 2 so
        # the "parallel" batch axis shards across v7x's two TensorCores
        # (no effect on single-TC v5e/v6e).
        bb = min(max_bb, BB_MAX, _round_up(pl.cdiv(B, 2), BB_ALIGN))
        bb = max(bb, BB_ALIGN)

    Bp = _round_up(B, bb)
    grid_b = Bp // bb

    # ---- pad inputs / layer-0 weight to the padded extents ---------------------
    if Bp != B or Fp != F:
        x = jnp.pad(x, ((0, Bp - B), (0, Fp - F)))

    w0, _ = params[0]
    if Fp != F:
        w0 = jnp.pad(w0, ((0, 0), (0, Fp - F)))
    # Pre-cast weights once (VMEM-resident, no per-step casts); biases stay f32.
    ws = [w0.astype(compute_dtype)] + [w.astype(compute_dtype) for w, _ in params[1:]]
    bs = [b.astype(jnp.float32) for _, b in params]

    # ---- specs ------------------------------------------------------------------
    in_specs = [pl.BlockSpec((bb, block_f), lambda i, k: (i, k))]
    flat = [x]
    # W0 is chunked along the feature axis (block index k); all other params use a
    # constant index_map so they stay VMEM-resident across grid steps.
    in_specs.append(pl.BlockSpec((HIDDEN, block_f), lambda i, k: (0, k)))
    in_specs.append(pl.BlockSpec(bs[0].shape, lambda i, k: (0, 0)))
    flat += [ws[0], bs[0]]
    for w, b in zip(ws[1:], bs[1:]):
        in_specs.append(pl.BlockSpec(w.shape, lambda i, k: (0, 0)))
        in_specs.append(pl.BlockSpec(b.shape, lambda i, k: (0, 0)))
        flat += [w, b]

    # Lane-dense output slab: (grid_b, 1, bb), reshaped to (B, 1) afterwards.
    out_spec = pl.BlockSpec((1, 1, bb), lambda i, k: (i, 0, 0))
    out_shape = jax.ShapeDtypeStruct((grid_b, 1, bb), out_dtype)

    kernel = functools.partial(mlp_kernel, compute_dtype=compute_dtype)

    out = pl.pallas_call(
        kernel,
        out_shape=out_shape,
        grid_spec=pltpu.PrefetchScalarGridSpec(
            num_scalar_prefetch=0,
            grid=(grid_b, grid_k),
            in_specs=in_specs,
            out_specs=out_spec,
            scratch_shapes=[pltpu.VMEM((HIDDEN, bb), jnp.float32)],
        ),
        compiler_params=pltpu.CompilerParams(
            dimension_semantics=("parallel", "arbitrary"),
            vmem_limit_bytes=int(vmem_limit),
        ),
    )(*flat)

    return out.reshape(Bp, 1)[:B]


def init_params(key, num_features):
    """Deterministic init mimicking PyTorch nn.Linear (uniform +-1/sqrt(fan_in)).

    Weights stored in PyTorch layout (out, in); biases as (out, 1) columns.
    """
    dims = [(HIDDEN, num_features), (HIDDEN, HIDDEN), (HIDDEN, HIDDEN),
            (HIDDEN, HIDDEN), (1, HIDDEN)]
    params = []
    for (fan_out, fan_in) in dims:
        key, kw, kb = jax.random.split(key, 3)
        bound = 1.0 / jnp.sqrt(jnp.float32(fan_in))
        w = jax.random.uniform(kw, (fan_out, fan_in), jnp.float32, -bound, bound)
        b = jax.random.uniform(kb, (fan_out, 1), jnp.float32, -bound, bound)
        params.append((w, b))
    return params


def reference_forward(x, params, compute_dtype=jnp.bfloat16):
    """Pure-JAX reference with the same compute-dtype casts as the kernel."""
    h = x
    for i, (w, b) in enumerate(params):
        h = lax.dot_general(h.astype(compute_dtype), w.astype(compute_dtype),
                            dimension_numbers=(((1,), (1,)), ((), ())),
                            preferred_element_type=jnp.float32) + b.T
        if i < len(params) - 1:
            h = jnp.maximum(h, 0.0)
    return h


if __name__ == "__main__":
    key = jax.random.PRNGKey(0)
    k_x, k_p = jax.random.split(key)

    # (batch, num_features, kwargs): tiny single block; explicit multi-block batch
    # tiling with padding; feature-axis (K) chunking; auto grid_b>=2 path.
    cases = (
        (16, 16, {}),
        (300, 16, {"block_b": 128}),
        (64, 256, {"block_f": 128}),
        (2048, 16, {}),
    )
    for batch, num_features, kwargs in cases:
        params = init_params(jax.random.fold_in(k_p, num_features), num_features)
        x = jax.random.normal(jax.random.fold_in(k_x, batch * 1000 + num_features),
                              (batch, num_features), jnp.float32)
        out = mlp_explicit_forward(x, params, **kwargs)
        out = jax.block_until_ready(out)

        ref = reference_forward(x, params)
        assert out.shape == (batch, 1), out.shape
        err = jnp.max(jnp.abs(out - ref))
        assert jnp.allclose(out, ref, atol=5e-3, rtol=5e-3), \
            f"batch={batch} F={num_features} max abs err {err}"

    print("KERNEL_OK")
</pallas_src>

<mosaic_0001>
module attributes {stable_mosaic.version = 11 : i64} {
  func.func @mlp_kernel(%arg0: i32, %arg1: i32, %arg2: memref<128x16xf32, #tpu.memory_space<vmem>>, %arg3: memref<32x16xbf16, #tpu.memory_space<vmem>>, %arg4: memref<32x1xf32, #tpu.memory_space<vmem>>, %arg5: memref<32x32xbf16, #tpu.memory_space<vmem>>, %arg6: memref<32x1xf32, #tpu.memory_space<vmem>>, %arg7: memref<32x32xbf16, #tpu.memory_space<vmem>>, %arg8: memref<32x1xf32, #tpu.memory_space<vmem>>, %arg9: memref<32x32xbf16, #tpu.memory_space<vmem>>, %arg10: memref<32x1xf32, #tpu.memory_space<vmem>>, %arg11: memref<1x32xbf16, #tpu.memory_space<vmem>>, %arg12: memref<1x1xf32, #tpu.memory_space<vmem>>, %arg13: memref<1x1x128xf32, #tpu.memory_space<vmem>>, %arg14: memref<32x128xf32, #tpu.memory_space<vmem>>) attributes {dimension_semantics = [#tpu.dimension_semantics<parallel>, #tpu.dimension_semantics<arbitrary>], iteration_bounds = array<i64: 1, 1>, scalar_prefetch = 0 : i64, scratch_operands = 1 : i64, tpu.core_type = #tpu.core_type<tc>, window_params = [{transform_indices = @transform_0, window_bounds = array<i64: 128, 16>}, {transform_indices = @transform_1, window_bounds = array<i64: 32, 16>}, {pipeline_mode = #tpu.pipeline_mode<synchronous>, transform_indices = @transform_2, window_bounds = array<i64: 32, 1>}, {pipeline_mode = #tpu.pipeline_mode<synchronous>, transform_indices = @transform_3, window_bounds = array<i64: 32, 32>}, {pipeline_mode = #tpu.pipeline_mode<synchronous>, transform_indices = @transform_4, window_bounds = array<i64: 32, 1>}, {pipeline_mode = #tpu.pipeline_mode<synchronous>, transform_indices = @transform_5, window_bounds = array<i64: 32, 32>}, {pipeline_mode = #tpu.pipeline_mode<synchronous>, transform_indices = @transform_6, window_bounds = array<i64: 32, 1>}, {pipeline_mode = #tpu.pipeline_mode<synchronous>, transform_indices = @transform_7, window_bounds = array<i64: 32, 32>}, {pipeline_mode = #tpu.pipeline_mode<synchronous>, transform_indices = @transform_8, window_bounds = array<i64: 32, 1>}, {pipeline_mode = #tpu.pipeline_mode<synchronous>, transform_indices = @transform_9, window_bounds = array<i64: 1, 32>}, {pipeline_mode = #tpu.pipeline_mode<synchronous>, transform_indices = @transform_10, window_bounds = array<i64: 1, 1>}, {transform_indices = @transform_11, window_bounds = array<i64: 1, 1, 128>}]} {
    %c0_i32 = arith.constant 0 : i32
    %0 = arith.cmpi eq, %arg1, %c0_i32 : i32
    %1 = arith.extui %0 : i1 to i32
    %c0_i32_0 = arith.constant 0 : i32
    %2 = arith.cmpi ne, %1, %c0_i32_0 : i32
    scf.if %2 {
      %cst_10 = arith.constant 0.000000e+00 : f32
      %13 = vector.broadcast %cst_10 : f32 to vector<32x128xf32>
      %c0_11 = arith.constant 0 : index
      %c0_12 = arith.constant 0 : index
      %14 = vector.load %arg14[%c0_11, %c0_12] : memref<32x128xf32, #tpu.memory_space<vmem>>, vector<32x128xf32>
      tpu.vector_store %arg14[%c0_11, %c0_12], %13 {strides = array<i32>} : memref<32x128xf32, #tpu.memory_space<vmem>>, vector<32x128xf32>,
    } else {
    }
    %c0 = arith.constant 0 : index
    %c0_1 = arith.constant 0 : index
    %3 = vector.load %arg2[%c0, %c0_1] : memref<128x16xf32, #tpu.memory_space<vmem>>, vector<128x16xf32>
    %4 = arith.truncf %3 : vector<128x16xf32> to vector<128x16xbf16>
    %c0_2 = arith.constant 0 : index
    %c0_3 = arith.constant 0 : index
    %5 = vector.load %arg14[%c0_2, %c0_3] : memref<32x128xf32, #tpu.memory_space<vmem>>, vector<32x128xf32>
    %c0_4 = arith.constant 0 : index
    %c0_5 = arith.constant 0 : index
    %6 = vector.load %arg3[%c0_4, %c0_5] : memref<32x16xbf16, #tpu.memory_space<vmem>>, vector<32x16xbf16>
    %cst = arith.constant dense<0.000000e+00> : vector<32x128xf32>
    %7 = tpu.matmul %6, %4, %cst {dimension_numbers = #tpu.dot_dimension_numbers<[1], [1], [0], [0], [0, 0, 1, 0], [], []>} : vector<32x16xbf16>, vector<128x16xbf16>, vector<32x128xf32> -> vector<32x128xf32>
    %8 = arith.addf %5, %7 : vector<32x128xf32>
    %c0_6 = arith.constant 0 : index
    %c0_7 = arith.constant 0 : index
    %9 = vector.load %arg14[%c0_6, %c0_7] : memref<32x128xf32, #tpu.memory_space<vmem>>, vector<32x128xf32>
    tpu.vector_store %arg14[%c0_6, %c0_7], %8 {strides = array<i32>} : memref<32x128xf32, #tpu.memory_space<vmem>>, vector<32x128xf32>,
    %c0_i32_8 = arith.constant 0 : i32
    %10 = arith.cmpi eq, %arg1, %c0_i32_8 : i32
    %11 = arith.extui %10 : i1 to i32
    %c0_i32_9 = arith.constant 0 : i32
    %12 = arith.cmpi ne, %11, %c0_i32_9 : i32
    scf.if %12 {
      %c0_10 = arith.constant 0 : index
      %c0_11 = arith.constant 0 : index
      %13 = vector.load %arg14[%c0_10, %c0_11] : memref<32x128xf32, #tpu.memory_space<vmem>>, vector<32x128xf32>
      %c0_12 = arith.constant 0 : index
      %c0_13 = arith.constant 0 : index
      %14 = vector.load %arg4[%c0_12, %c0_13] : memref<32x1xf32, #tpu.memory_space<vmem>>, vector<32x1xf32>
      %15 = vector.broadcast %14 : vector<32x1xf32> to vector<32x128xf32>
      %16 = arith.addf %13, %15 : vector<32x128xf32>
      %cst_14 = arith.constant 0.000000e+00 : f32
      %17 = vector.broadcast %cst_14 : f32 to vector<32x128xf32>
      %18 = arith.maximumf %16, %17 : vector<32x128xf32>
      %19 = arith.truncf %18 : vector<32x128xf32> to vector<32x128xbf16>
      %c0_15 = arith.constant 0 : index
      %c0_16 = arith.constant 0 : index
      %20 = vector.load %arg5[%c0_15, %c0_16] : memref<32x32xbf16, #tpu.memory_space<vmem>>, vector<32x32xbf16>
      %cst_17 = arith.constant dense<0.000000e+00> : vector<32x128xf32>
      %21 = tpu.matmul %20, %19, %cst_17 {dimension_numbers = #tpu.dot_dimension_numbers<[1], [0], [0], [1], [0, 0, 1, 1], [], []>} : vector<32x32xbf16>, vector<32x128xbf16>, vector<32x128xf32> -> vector<32x128xf32>
      %c0_18 = arith.constant 0 : index
      %c0_19 = arith.constant 0 : index
      %22 = vector.load %arg6[%c0_18, %c0_19] : memref<32x1xf32, #tpu.memory_space<vmem>>, vector<32x1xf32>
      %23 = vector.broadcast %22 : vector<32x1xf32> to vector<32x128xf32>
      %24 = arith.addf %21, %23 : vector<32x128xf32>
      %cst_20 = arith.constant 0.000000e+00 : f32
      %25 = vector.broadcast %cst_20 : f32 to vector<32x128xf32>
      %26 = arith.maximumf %24, %25 : vector<32x128xf32>
      %27 = arith.truncf %26 : vector<32x128xf32> to vector<32x128xbf16>
      %c0_21 = arith.constant 0 : index
      %c0_22 = arith.constant 0 : index
      %28 = vector.load %arg7[%c0_21, %c0_22] : memref<32x32xbf16, #tpu.memory_space<vmem>>, vector<32x32xbf16>
      %cst_23 = arith.constant dense<0.000000e+00> : vector<32x128xf32>
      %29 = tpu.matmul %28, %27, %cst_23 {dimension_numbers = #tpu.dot_dimension_numbers<[1], [0], [0], [1], [0, 0, 1, 1], [], []>} : vector<32x32xbf16>, vector<32x128xbf16>, vector<32x128xf32> -> vector<32x128xf32>
      %c0_24 = arith.constant 0 : index
      %c0_25 = arith.constant 0 : index
      %30 = vector.load %arg8[%c0_24, %c0_25] : memref<32x1xf32, #tpu.memory_space<vmem>>, vector<32x1xf32>
      %31 = vector.broadcast %30 : vector<32x1xf32> to vector<32x128xf32>
      %32 = arith.addf %29, %31 : vector<32x128xf32>
      %cst_26 = arith.constant 0.000000e+00 : f32
      %33 = vector.broadcast %cst_26 : f32 to vector<32x128xf32>
      %34 = arith.maximumf %32, %33 : vector<32x128xf32>
      %35 = arith.truncf %34 : vector<32x128xf32> to vector<32x128xbf16>
      %c0_27 = arith.constant 0 : index
      %c0_28 = arith.constant 0 : index
      %36 = vector.load %arg9[%c0_27, %c0_28] : memref<32x32xbf16, #tpu.memory_space<vmem>>, vector<32x32xbf16>
      %cst_29 = arith.constant dense<0.000000e+00> : vector<32x128xf32>
      %37 = tpu.matmul %36, %35, %cst_29 {dimension_numbers = #tpu.dot_dimension_numbers<[1], [0], [0], [1], [0, 0, 1, 1], [], []>} : vector<32x32xbf16>, vector<32x128xbf16>, vector<32x128xf32> -> vector<32x128xf32>
      %c0_30 = arith.constant 0 : index
      %c0_31 = arith.constant 0 : index
      %38 = vector.load %arg10[%c0_30, %c0_31] : memref<32x1xf32, #tpu.memory_space<vmem>>, vector<32x1xf32>
      %39 = vector.broadcast %38 : vector<32x1xf32> to vector<32x128xf32>
      %40 = arith.addf %37, %39 : vector<32x128xf32>
      %cst_32 = arith.constant 0.000000e+00 : f32
      %41 = vector.broadcast %cst_32 : f32 to vector<32x128xf32>
      %42 = arith.maximumf %40, %41 : vector<32x128xf32>
      %43 = arith.truncf %42 : vector<32x128xf32> to vector<32x128xbf16>
      %c0_33 = arith.constant 0 : index
      %c0_34 = arith.constant 0 : index
      %44 = vector.load %arg11[%c0_33, %c0_34] : memref<1x32xbf16, #tpu.memory_space<vmem>>, vector<1x32xbf16>
      %cst_35 = arith.constant dense<0.000000e+00> : vector<1x128xf32>
      %45 = tpu.matmul %44, %43, %cst_35 {dimension_numbers = #tpu.dot_dimension_numbers<[1], [0], [0], [1], [0, 0, 1, 1], [], []>} : vector<1x32xbf16>, vector<32x128xbf16>, vector<1x128xf32> -> vector<1x128xf32>
      %c0_36 = arith.constant 0 : index
      %c0_37 = arith.constant 0 : index
      %46 = vector.load %arg12[%c0_36, %c0_37] : memref<1x1xf32, #tpu.memory_space<vmem>>, vector<1x1xf32>
      %47 = vector.broadcast %46 : vector<1x1xf32> to vector<1x128xf32>
      %48 = arith.addf %45, %47 : vector<1x128xf32>
      %c0_38 = arith.constant 0 : index
      %c0_39 = arith.constant 0 : index
      %c0_40 = arith.constant 0 : index
      %49 = vector.load %arg13[%c0_38, %c0_39, %c0_40] : memref<1x1x128xf32, #tpu.memory_space<vmem>>, vector<1x1x128xf32>
      %50 = vector.shape_cast %49 : vector<1x1x128xf32> to vector<1x128xf32>
      %51 = vector.shape_cast %48 : vector<1x128xf32> to vector<1x1x128xf32>
      tpu.vector_store %arg13[%c0_38, %c0_39, %c0_40], %51 {strides = array<i32>} : memref<1x1x128xf32, #tpu.memory_space<vmem>>, vector<1x1x128xf32>,
    } else {
    }
    return
  }
  func.func @transform_0(%arg0: i32, %arg1: i32) -> (i32, i32) {
    %c0_i32 = arith.constant 0 : i32
    return %arg0, %arg1 : i32, i32
  }
  func.func @transform_1(%arg0: i32, %arg1: i32) -> (i32, i32) {
    %c0_i32 = arith.constant 0 : i32
    %c0_i32_0 = arith.constant 0 : i32
    return %c0_i32, %arg1 : i32, i32
  }
  func.func @transform_2(%arg0: i32, %arg1: i32) -> (i32, i32) {
    %c0_i32 = arith.constant 0 : i32
    %c0_i32_0 = arith.constant 0 : i32
    %c0_i32_1 = arith.constant 0 : i32
    return %c0_i32, %c0_i32_0 : i32, i32
  }
  func.func @transform_3(%arg0: i32, %arg1: i32) -> (i32, i32) {
    %c0_i32 = arith.constant 0 : i32
    %c0_i32_0 = arith.constant 0 : i32
    %c0_i32_1 = arith.constant 0 : i32
    return %c0_i32, %c0_i32_0 : i32, i32
  }
  func.func @transform_4(%arg0: i32, %arg1: i32) -> (i32, i32) {
    %c0_i32 = arith.constant 0 : i32
    %c0_i32_0 = arith.constant 0 : i32
    %c0_i32_1 = arith.constant 0 : i32
    return %c0_i32, %c0_i32_0 : i32, i32
  }
  func.func @transform_5(%arg0: i32, %arg1: i32) -> (i32, i32) {
    %c0_i32 = arith.constant 0 : i32
    %c0_i32_0 = arith.constant 0 : i32
    %c0_i32_1 = arith.constant 0 : i32
    return %c0_i32, %c0_i32_0 : i32, i32
  }
  func.func @transform_6(%arg0: i32, %arg1: i32) -> (i32, i32) {
    %c0_i32 = arith.constant 0 : i32
    %c0_i32_0 = arith.constant 0 : i32
    %c0_i32_1 = arith.constant 0 : i32
    return %c0_i32, %c0_i32_0 : i32, i32
  }
  func.func @transform_7(%arg0: i32, %arg1: i32) -> (i32, i32) {
    %c0_i32 = arith.constant 0 : i32
    %c0_i32_0 = arith.constant 0 : i32
    %c0_i32_1 = arith.constant 0 : i32
    return %c0_i32, %c0_i32_0 : i32, i32
  }
  func.func @transform_8(%arg0: i32, %arg1: i32) -> (i32, i32) {
    %c0_i32 = arith.constant 0 : i32
    %c0_i32_0 = arith.constant 0 : i32
    %c0_i32_1 = arith.constant 0 : i32
    return %c0_i32, %c0_i32_0 : i32, i32
  }
  func.func @transform_9(%arg0: i32, %arg1: i32) -> (i32, i32) {
    %c0_i32 = arith.constant 0 : i32
    %c0_i32_0 = arith.constant 0 : i32
    %c0_i32_1 = arith.constant 0 : i32
    return %c0_i32, %c0_i32_0 : i32, i32
  }
  func.func @transform_10(%arg0: i32, %arg1: i32) -> (i32, i32) {
    %c0_i32 = arith.constant 0 : i32
    %c0_i32_0 = arith.constant 0 : i32
    %c0_i32_1 = arith.constant 0 : i32
    return %c0_i32, %c0_i32_0 : i32, i32
  }
  func.func @transform_11(%arg0: i32, %arg1: i32) -> (i32, i32, i32) {
    %c0_i32 = arith.constant 0 : i32
    %c0_i32_0 = arith.constant 0 : i32
    %c0_i32_1 = arith.constant 0 : i32
    return %arg0, %c0_i32, %c0_i32_0 : i32, i32, i32
  }
}

</mosaic_0001>

<bundles_post_ra>
// kernel: tpu_custom_call.1
= control target key start
LH: loop header
LB: loop body
LE: loop exit
PB: predicated region body
PF: predicated region fallthrough
CT: control target
= control target key end

     0   :  { %s728_s0 = inlined_call_operand.vmem [shape: f32[128,16], index: 0, kind: input, shape index: {}]   ;;  %s729_s1 = inlined_call_operand.vmem [shape: bf16[32,16], index: 1, kind: input, shape index: {}]   ;;  %s730_s2 = inlined_call_operand.vmem [shape: f32[32,1], index: 2, kind: input, shape index: {}]   ;;  %s731_s3 = inlined_call_operand.vmem [shape: bf16[32,32], index: 3, kind: input, shape index: {}]   ;;  %s732_s4 = inlined_call_operand.vmem [shape: f32[32,1], index: 4, kind: input, shape index: {}]   ;;  %s733_s5 = inlined_call_operand.vmem [shape: bf16[32,32], index: 5, kind: input, shape index: {}]   ;;  %s734_s6 = inlined_call_operand.vmem [shape: f32[32,1], index: 6, kind: input, shape index: {}]   ;;  %s735_s7 = inlined_call_operand.vmem [shape: bf16[32,32], index: 7, kind: input, shape index: {}]   ;;  %s736_s8 = inlined_call_operand.vmem [shape: f32[32,1], index: 8, kind: input, shape index: {}]   ;;  %s737_s9 = inlined_call_operand.vmem [shape: bf16[1,32], index: 9, kind: input, shape index: {}]   ;;  %s738_s10 = inlined_call_operand.<no memory space> [shape: f32[1,1], index: 10, kind: input, shape index: {}]   ;;  %s739_s11 = inlined_call_operand.hbm [shape: f32[1,1,128], index: 11, kind: output, shape index: {}]  }
   0x1   :  { %v16_v0 = vstv %s738_s10 }
   0x2   :  { %17 = vst [vmem:[#allocation3] sm:$0x1] %v16_v0 }
   0x3   :  { %v64_v1 = vld [vmem:[%s728_s0 + $0x70] sm:$0xff]  ;;  %v65_v2 = vld [vmem:[%s728_s0 + $0x78] sm:$0xff]  ;;  %vm92_vm0 = vcmask 130048   ;;  %v62_v4 = vld [vmem:[%s728_s0 + $0x60] sm:$0xff] }
   0x4   :  { %v73_v3 = vpack.c.bf16 %v65_v2, %v64_v1  ;;  %v63_v5 = vld [vmem:[%s728_s0 + $0x68] sm:$0xff] }
   0x6   :  { %v121_v6 = vsel %vm92_vm0, %v73_v3, 0 }
   0x7   :  { %18 = vsyncpa [#allocation5], 0  ;;  %123 = vmatpush.bf16.xpose.msra.mxu0 %v121_v6  ;;  %v72_v7 = vpack.c.bf16 %v63_v5, %v62_v4  ;;  %v60_v9 = vld [vmem:[%s728_s0 + $0x50] sm:$0xff]  ;;  %v61_v10 = vld [vmem:[%s728_s0 + $0x58] sm:$0xff]  ;;  %v520_v18 = vmov 0   ;;  %vm229_vm1 = vcmask 261120  }
   0x8   :  { %v71_v11 = vpack.c.bf16 %v61_v10, %v60_v9  ;;  %v58_v13 = vld [vmem:[%s728_s0 + $0x40] sm:$0xff]  ;;  %v59_v14 = vld [vmem:[%s728_s0 + $0x48] sm:$0xff]  ;;  %v159_v15 = vld [vmem:[%s730_s2 + $0x10] sm:$0xff]  ;;  %491 = vset.pattern.permute.xlu0 %v520_v18  ;;  %492 = vset.pattern.permute.xlu1 %v520_v18  ;;  %s521_s30 = smov [#allocation4]   ;;  %s431_s14 = sshll.u32 %s739_s11, 4  ;;  %s432_s14 = int_to_ptr.hbm [resolvable:$true] %s431_s14 }
   0x9   :  { %v118_v8 = vsel %vm92_vm0, %v72_v7, 0  ;;  %v157_v16 = vld [vmem:[%s730_s2] sm:$0xff]  ;;  %v70_v17 = vpack.c.bf16 %v59_v14, %v58_v13  ;;  %173 = vperm.xlu0 %491, %v159_v15   ;;  %493 = vset.pattern.permute.xlu2 %v520_v18  ;;  %v56_v20 = vld [vmem:[%s728_s0 + $0x30] sm:$0xff]  ;;  %v57_v21 = vld [vmem:[%s728_s0 + $0x38] sm:$0xff] }
   0xa   :  { %v115_v12 = vsel %vm92_vm0, %v71_v11, 0  ;;  %163 = vperm.xlu1 %492, %v157_v16   ;;  %v160_v22 = vld [vmem:[%s730_s2 + $0x18] sm:$0xff]  ;;  %v158_v23 = vld [vmem:[%s730_s2 + $0x8] sm:$0xff]  ;;  %v69_v24 = vpack.c.bf16 %v57_v21, %v56_v20  ;;  %v54_v26 = vld [vmem:[%s728_s0 + $0x20] sm:$0xff] }
   0xb   :  { %v112_v19 = vsel %vm92_vm0, %v70_v17, 0  ;;  %v55_v27 = vld [vmem:[%s728_s0 + $0x28] sm:$0xff]  ;;  %v195_v28 = vld [vmem:[%s732_s4] sm:$0xff]  ;;  %v52_v32 = vld [vmem:[%s728_s0 + $0x10] sm:$0xff] }
   0xc   :  { %v109_v25 = vsel %vm92_vm0, %v69_v24, 0  ;;  %v196_v29 = vld [vmem:[%s732_s4 + $0x8] sm:$0xff]  ;;  %v68_v30 = vpack.c.bf16 %v55_v27, %v54_v26  ;;  %v53_v33 = vld [vmem:[%s728_s0 + $0x18] sm:$0xff]  ;;  %v265_v35 = vld [vmem:[%s734_s6] sm:$0xff] }
   0xd   :  { %v268_v34 = vld [vmem:[%s734_s6 + $0x18] sm:$0xff]  ;;  %v67_v36 = vpack.c.bf16 %v53_v33, %v52_v32  ;;  %v50_v38 = vld [vmem:[%s728_s0] sm:$0xff]  ;;  %v51_v39 = vld [vmem:[%s728_s0 + $0x8] sm:$0xff]  ;;  %s429_s0 = sshll.u32 %s521_s30, 4  ;;  %s430_s0 = int_to_ptr.vmem [resolvable:$true] %s429_s0 }
   0xe   :  { %v106_v31 = vsel %vm92_vm0, %v68_v30, 0  ;;  %v336_v40 = vld [vmem:[%s736_s8 + $0x10] sm:$0xff]  ;;  %v337_v41 = vld [vmem:[%s736_s8 + $0x18] sm:$0xff]  ;;  %v66_v42 = vpack.c.bf16 %v51_v39, %v50_v38  ;;  %v335_v44 = vld [vmem:[%s736_s8 + $0x8] sm:$0xff] }
   0xf   :  { %124 = vmatpush.bf16.xpose.msra.mxu0 %v118_v8  ;;  %v103_v37 = vsel %vm92_vm0, %v67_v36, 0  ;;  %v400_v45 = vld [vmem:[#allocation3] sm:$0x1]  ;;  %v482_v47 = vld [vmem:[%s729_s1 + $0x8] sm:$0xff]  ;;  %v197_v53 = vld [vmem:[%s732_s4 + $0x10] sm:$0xff] }
  0x10   :  { %v100_v43 = vsel %vm92_vm0, %v66_v42, 0  ;;  %v481_v46 = vld [vmem:[%s729_s1] sm:$0xff]  ;;  %211 = vperm.xlu2 %493, %v197_v53   ;;  %v198_v63 = vld [vmem:[%s732_s4 + $0x18] sm:$0xff]  ;;  %v267_v5 = vld [vmem:[%s734_s6 + $0x10] sm:$0xff] }
  0x11   :  { %178 = vperm.xlu0 %491, %v160_v22   ;;  %v483_v4 = vld [vmem:[%s731_s3] sm:$0xff]  ;;  %v266_v6 = vld [vmem:[%s734_s6 + $0x8] sm:$0xff] }
  0x12   :  { %168 = vperm.xlu1 %492, %v158_v23   ;;  %v484_v7 = vld [vmem:[%s731_s3 + $0x8] sm:$0xff]  ;;  %v334_v8 = vld [vmem:[%s736_s8] sm:$0xff] }
  0x13   :  { %v485_v27 = vld [vmem:[%s733_s5] sm:$0xff] }
  0x17   :  { %125 = vmatpush.bf16.xpose.msra.mxu0 %v115_v12 }
  0x18   :  { %216 = vperm.xlu2 %493, %v198_v63  }
  0x19   :  { %201 = vperm.xlu0 %491, %v195_v28   ;;  %v486_v28 = vld [vmem:[%s733_s5 + $0x8] sm:$0xff] }
  0x1a   :  { %206 = vperm.xlu1 %492, %v196_v29  }
  0x1f   :  { %126 = vmatpush.bf16.xpose.msra.mxu0 %v112_v19 }
  0x20   :  { %281 = vperm.xlu2 %493, %v267_v5  }
  0x21   :  { %286 = vperm.xlu0 %491, %v268_v34  }
  0x22   :  { %271 = vperm.xlu1 %492, %v265_v35  }
  0x27   :  { %127 = vmatpush.bf16.xpose.msra.mxu0 %v109_v25 }
  0x28   :  { %276 = vperm.xlu2 %493, %v266_v6  }
  0x29   :  { %350 = vperm.xlu0 %491, %v336_v40  }
  0x2a   :  { %355 = vperm.xlu1 %492, %v337_v41  }
  0x2f   :  { %128 = vmatpush.bf16.xpose.msra.mxu0 %v106_v31 }
  0x30   :  { %340 = vperm.xlu2 %493, %v334_v8  }
  0x31   :  { %345 = vperm.xlu0 %491, %v335_v44  }
  0x32   :  { %403 = vperm.xlu1 %492, %v400_v45  }
  0x37   :  { %129 = vmatpush.bf16.xpose.msra.mxu0 %v103_v37 }
  0x3f   :  { %130 = vmatpush.bf16.xpose.msra.mxu0 %v100_v43 }
  0x46   :  { %448 = vmatmul.msk.bf16.vlgmr.msra.gmra.mxu0 %vm92_vm0, %v481_v46 }
  0x56   :  { %449 = vmatmul.msk.bf16.gmra.mxu0 %vm92_vm0, %v482_v47  ;;  %v487_v47 = vld [vmem:[%s735_s7] sm:$0xff] }
  0x6a   :  { %v212_v11 = vpop.permute.xlu2 %211 }
  0x72   :  { %v217_v15 = vpop.permute.xlu2 %216 }
  0x7a   :  { %v282_v31 = vpop.permute.xlu2 %281 }
  0x7b   :  { %v174_v50 = vpop.permute.xlu0 %173 }
  0x7c   :  { %v164_v51 = vpop.permute.xlu1 %163 }
  0x82   :  { %v277_v35 = vpop.permute.xlu2 %276 }
  0x83   :  { %v179_v54 = vpop.permute.xlu0 %178 }
  0x84   :  { %v169_v56 = vpop.permute.xlu1 %168 }
  0x8b   :  { %v202_v19 = vpop.permute.xlu0 %201 }
  0x8c   :  { %v207_v13 = vpop.permute.xlu1 %206 }
  0x93   :  { %v287_v33 = vpop.permute.xlu0 %286 }
  0x94   :  { %v272_v39 = vpop.permute.xlu1 %271 }
  0x9c   :  { %v356_v53 = vpop.permute.xlu1 %355 }
  0xc3   :  { %v132_v48 = vpop.f32.mrf.mxu0 }
  0xc4   :  { %v181_v60 = vadd.f32 %v164_v51, %v132_v48  ;;  %v488_v48 = vld [vmem:[%s735_s7 + $0x8] sm:$0xff]  ;;  %v351_v51 = vpop.permute.xlu0 %350 }
  0xc6   :  { %v185_v2 = vmax.f32 %v181_v60, 0.0 }
  0xcb   :  { %v134_v49 = vpop.f32.mrf.mxu0 }
  0xcc   :  { %v182_v58 = vadd.f32 %v169_v56, %v134_v49 }
  0xce   :  { %v186_v0 = vmax.f32 %v182_v58, 0.0 }
  0xd0   :  { %v189_v3 = vpack.c.bf16 %v186_v0, %v185_v2 }
  0xd3   :  { %v137_v52 = vpop.f32.mrf.mxu0 }
  0xd4   :  { %v183_v55 = vadd.f32 %v174_v50, %v137_v52 }
  0xd6   :  { %v187_v61 = vmax.f32 %v183_v55, 0.0  ;;  %v346_v55 = vpop.permute.xlu0 %345 }
  0xdb   :  { %v139_v57 = vpop.f32.mrf.mxu0 }
  0xdc   :  { %v184_v59 = vadd.f32 %v179_v54, %v139_v57 }
  0xde   :  { %v188_v62 = vmax.f32 %v184_v59, 0.0  ;;  %v341_v59 = vpop.permute.xlu2 %340 }
  0xe0   :  { %v190_v1 = vpack.c.bf16 %v188_v62, %v187_v61 }
  0xe2   :  { %242 = vmatpush.bf16.msra.mxu1 %v190_v1 }
  0xe6   :  { %243 = vmatpush.bf16.msra.mxu1 %v189_v3  ;;  %v399_v3 = vld [vmem:[%s737_s9] sm:$0x1] }
  0xe9   :  { %458 = vmatmul.msk.bf16.vlgmr.msra.gmra.mxu1 %vm229_vm1, %v483_v4  ;;  %v404_v4 = vpop.permute.xlu1 %403 }
  0xea   :  { %v406_v5 = vperm.slane %v404_v4, 0 }
  0xf9   :  { %459 = vmatmul.msk.bf16.gmra.mxu1 %vm229_vm1, %v484_v7 }
 0x166   :  { %v245_v9 = vpop.f32.mrf.mxu1 }
 0x167   :  { %v246_v20 = vadd.f32 %v245_v9, %v202_v19 }
 0x169   :  { %v255_v25 = vmax.f32 %v246_v20, 0.0 }
 0x16e   :  { %v247_v10 = vpop.f32.mrf.mxu1 }
 0x16f   :  { %v248_v17 = vadd.f32 %v247_v10, %v207_v13 }
 0x171   :  { %v256_v23 = vmax.f32 %v248_v17, 0.0 }
 0x173   :  { %v259_v26 = vpack.c.bf16 %v256_v23, %v255_v25 }
 0x176   :  { %v250_v12 = vpop.f32.mrf.mxu1 }
 0x177   :  { %v251_v14 = vadd.f32 %v250_v12, %v212_v11 }
 0x179   :  { %v257_v21 = vmax.f32 %v251_v14, 0.0 }
 0x17e   :  { %v252_v16 = vpop.f32.mrf.mxu1 }
 0x17f   :  { %v253_v18 = vadd.f32 %v252_v16, %v217_v15 }
 0x181   :  { %v258_v22 = vmax.f32 %v253_v18, 0.0 }
 0x183   :  { %v260_v24 = vpack.c.bf16 %v258_v22, %v257_v21 }
 0x185   :  { %311 = vmatpush.bf16.msra.mxu2 %v260_v24 }
 0x189   :  { %312 = vmatpush.bf16.msra.mxu2 %v259_v26 }
 0x18c   :  { %468 = vmatmul.msk.bf16.vlgmr.msra.gmra.mxu2 %vm229_vm1, %v485_v27 }
 0x19c   :  { %469 = vmatmul.msk.bf16.gmra.mxu2 %vm229_vm1, %v486_v28 }
 0x20f   :  { %v314_v29 = vpop.f32.mrf.mxu2 }
 0x210   :  { %v315_v40 = vadd.f32 %v314_v29, %v272_v39 }
 0x212   :  { %v324_v45 = vmax.f32 %v315_v40, 0.0 }
 0x217   :  { %v316_v30 = vpop.f32.mrf.mxu2 }
 0x218   :  { %v317_v37 = vadd.f32 %v316_v30, %v277_v35 }
 0x21a   :  { %v325_v43 = vmax.f32 %v317_v37, 0.0 }
 0x21c   :  { %v328_v46 = vpack.c.bf16 %v325_v43, %v324_v45 }
 0x21f   :  { %v319_v32 = vpop.f32.mrf.mxu2 }
 0x220   :  { %v320_v34 = vadd.f32 %v319_v32, %v282_v31 }
 0x222   :  { %v326_v41 = vmax.f32 %v320_v34, 0.0 }
 0x227   :  { %v321_v36 = vpop.f32.mrf.mxu2 }
 0x228   :  { %v322_v38 = vadd.f32 %v321_v36, %v287_v33 }
 0x22a   :  { %v327_v42 = vmax.f32 %v322_v38, 0.0 }
 0x22c   :  { %v329_v44 = vpack.c.bf16 %v327_v42, %v326_v41 }
 0x22e   :  { %380 = vmatpush.bf16.msra.mxu3 %v329_v44 }
 0x232   :  { %381 = vmatpush.bf16.msra.mxu3 %v328_v46 }
 0x235   :  { %478 = vmatmul.msk.bf16.vlgmr.msra.gmra.mxu3 %vm229_vm1, %v487_v47 }
 0x245   :  { %479 = vmatmul.msk.bf16.gmra.mxu3 %vm229_vm1, %v488_v48 }
 0x2b8   :  { %v383_v49 = vpop.f32.mrf.mxu3 }
 0x2b9   :  { %v384_v60 = vadd.f32 %v383_v49, %v341_v59 }
 0x2bb   :  { %v393_v1 = vmax.f32 %v384_v60, 0.0 }
 0x2c0   :  { %v385_v50 = vpop.f32.mrf.mxu3 }
 0x2c1   :  { %v386_v57 = vadd.f32 %v385_v50, %v346_v55 }
 0x2c3   :  { %v394_v63 = vmax.f32 %v386_v57, 0.0 }
 0x2c5   :  { %v397_v2 = vpack.c.bf16 %v394_v63, %v393_v1 }
 0x2c8   :  { %v388_v52 = vpop.f32.mrf.mxu3 }
 0x2c9   :  { %v389_v54 = vadd.f32 %v388_v52, %v351_v51 }
 0x2cb   :  { %v395_v61 = vmax.f32 %v389_v54, 0.0 }
 0x2d0   :  { %v390_v56 = vpop.f32.mrf.mxu3 }
 0x2d1   :  { %v391_v58 = vadd.f32 %v390_v56, %v356_v53 }
 0x2d3   :  { %v396_v62 = vmax.f32 %v391_v58, 0.0 }
 0x2d5   :  { %v398_v0 = vpack.c.bf16 %v396_v62, %v395_v61 }
 0x2d7   :  { %416 = vmatpush.bf16.msrb.mxu1 %v398_v0 }
 0x2db   :  { %417 = vmatpush.bf16.msrb.mxu1 %v397_v2 }
 0x2de   :  { %480 = vmatmul.msk.bf16.vlgmr.msrb.gmra.mxu1 %vm229_vm1, %v399_v3 }
 0x35b   :  { %v419_v6 = vpop.f32.mrf.mxu1 }
 0x35c   :  { %v420_v7 = vadd.f32 %v419_v6, %v406_v5 }
 0x35e   :  { %423 = vst [vmem:[#allocation4] sm:$0x1] %v420_v7 }
 0x35f   :  { %434 = dma.vmem_to_hbm [thread:$0]  %s430_s0, 16, %s432_s14, [#allocation5]  }
 0x363   :  { %v421_v8 = vpop.f32.mrf.mxu1 }
 0x364   :  { %518 = dma.done.wait [#allocation5], 16  }
 0x365   :  { %519 = vsyncadd [#allocation5], 4294967280 }
 0x366   :  { %439 = vsyncpa [#allocation5], 1 }

</bundles_post_ra>
